<compile_context>
chip_gen: v6e
topology: v6e:2x2x1
jax: 0.10.0
libtpu: 0.0.40
codegen_flags: <defaults>
</compile_context>

<pallas_src>
import functools

import jax
import jax.numpy as jnp
import numpy as np
from jax.experimental import pallas as pl
from jax.experimental.pallas import tpu as pltpu

EPS = 1e-6       # module-level EPS in the PyTorch code
BN_EPS = 1e-5    # nn.BatchNorm default eps
_VMEM_LIMIT = 48 * 1024 * 1024
_TS_CAP = 4096   # spatial tile cap (lane axis); working set stays well under VMEM


def _round_up(x, m):
    return (x + m - 1) // m * m


def _choose_tiling(s2, cap=_TS_CAP):
    """Return (ts, s2_padded): lane-dense spatial tile and padded extent."""
    if s2 % 128 == 0:
        if s2 <= cap:
            return s2, s2
        best = 0
        t = 128
        while t <= cap:
            if s2 % t == 0:
                best = t
            t += 128
        if best:
            return best, s2
    # Awkward extent: pad to a multiple of a lane-dense tile.
    ts = min(cap, _round_up(s2, 128))
    return ts, _round_up(s2, ts)


def _stats_kernel(x_ref, wf_ref, r_ref, s1_ref, s2_ref):
    """Pass 1: p (interleaved) = kron(Wf, I3) @ x_int; per-channel
    sum(||p||) and sum(||p||^2) partials for the batch-norm statistics.

    x_ref: (1, 3*Cin, TS); wf_ref: (3*Cout, 3*Cin); r_ref: (Cout, 3*Cout)
    (per-channel component-sum matrix); s*_ref: (1, 1, Cout, 1)."""
    @pl.when(pl.program_id(2) == 0)
    def _():
        s1_ref[...] = jnp.zeros_like(s1_ref)
        s2_ref[...] = jnp.zeros_like(s2_ref)

    p = jnp.dot(wf_ref[...], x_ref[0],
                preferred_element_type=jnp.float32)              # (3*Cout, TS)
    psq = jnp.dot(r_ref[...], p * p,
                  preferred_element_type=jnp.float32)            # (Cout, TS)
    norm = jnp.sqrt(psq)
    s1_ref[...] += jnp.sum(norm, axis=-1, keepdims=True)[None, None]
    s2_ref[...] += jnp.sum(psq, axis=-1, keepdims=True)[None, None]


def _act_kernel(x_ref, w_ref, g_ref, mean_ref, invstd_ref, o_ref, *,
                negative_slope, c3):
    """Pass 2: recompute interleaved p/d with the fused kron weight, apply
    VN batch-norm rescale + VN leaky relu, single dense full-tile store.

    x_ref: (1, 3*Cin, TS); w_ref: (6*Cout, 3*Cin) = [kron(Wf,I3); kron(Wd,I3)];
    g_ref: (3*Cout, 3*Cout) block-diag 3x3 ones (per-channel sum + broadcast);
    mean/invstd: (3*Cout, 1) channel stats repeated per component;
    o_ref: (1, 3*Cout, TS) interleaved output (row 3*o+k)."""
    pd = jnp.dot(w_ref[...], x_ref[0],
                 preferred_element_type=jnp.float32)             # (6*Cout, TS)
    p = pd[:c3]                                                   # (3*Cout, TS)
    d = pd[c3:]

    g = g_ref[...]
    # Per-channel reductions, replicated back across the 3 component rows,
    # done on the (idle) MXU instead of strided sublane slices.
    psq_b = jnp.dot(g, p * p, preferred_element_type=jnp.float32)
    pdot_b = jnp.dot(g, p * d, preferred_element_type=jnp.float32)
    dsq_b = jnp.dot(g, d * d, preferred_element_type=jnp.float32)

    # VN batch-norm: p_bn = p / ||p|| * (||p|| - mean) * invstd
    #              = p * invstd * (1 - mean * rsqrt(||p||^2))
    inv_norm = jax.lax.rsqrt(psq_b)
    scale = invstd_ref[...] * (1.0 - mean_ref[...] * inv_norm)    # (3*Cout, TS)

    dotp = scale * pdot_b                                         # <p_bn, d>
    coef = jnp.where(dotp >= 0.0, 0.0, dotp / (dsq_b + EPS)) * (1.0 - negative_slope)
    o_ref[0] = scale * p - coef * d


def vn_linear_leaky_relu(x, w_feat, w_dir, *, negative_slope=0.2, ts=None):
    """x: [B, C_in, 3, N, M]; w_feat/w_dir: [C_out, C_in] (nn.Linear layout).
    Returns [B, C_out, 3, N, M]."""
    B, Cin, K, N, M = x.shape
    assert K == 3
    Cout = w_feat.shape[0]
    assert w_dir.shape == (Cout, Cin)
    # TODO(synk): share_nonlinearity=True (C_out_dir == 1) path not implemented.
    S2 = N * M

    if ts is None:
        ts, S2p = _choose_tiling(S2)
    else:
        S2p = _round_up(S2, ts)
    nt = S2p // ts

    # Interleaved (channel-major, component-minor) view of x: free reshape.
    x_int = x.reshape(B, Cin * 3, S2).astype(jnp.float32)
    if S2p != S2:
        # Zero padding contributes 0 to the stats sums; padded output columns
        # are sliced off below.
        x_int = jnp.pad(x_int, ((0, 0), (0, 0), (0, S2p - S2)))

    eye3 = jnp.eye(3, dtype=jnp.float32)
    wf_big = jnp.kron(w_feat.astype(jnp.float32), eye3)           # (3*Cout, 3*Cin)
    wd_big = jnp.kron(w_dir.astype(jnp.float32), eye3)
    w_big = jnp.concatenate([wf_big, wd_big], axis=0)             # (6*Cout, 3*Cin)
    gmat = jnp.kron(jnp.eye(Cout, dtype=jnp.float32),
                    jnp.ones((3, 3), jnp.float32))                # (3*Cout, 3*Cout)
    rmat = jnp.kron(jnp.eye(Cout, dtype=jnp.float32),
                    jnp.ones((1, 3), jnp.float32))                # (Cout, 3*Cout)

    # --- pass 1: BN statistics (per-(batch, chunk) partials) ---------------
    no = 2 if (nt >= 2 and nt % 2 == 0) else 1   # extra parallel axis for v7x
    ni = nt // no
    s1, s2 = pl.pallas_call(
        _stats_kernel,
        out_shape=(
            jax.ShapeDtypeStruct((B, no, Cout, 1), jnp.float32),
            jax.ShapeDtypeStruct((B, no, Cout, 1), jnp.float32),
        ),
        grid_spec=pltpu.PrefetchScalarGridSpec(
            num_scalar_prefetch=0,
            grid=(B, no, ni),
            in_specs=[
                pl.BlockSpec((1, Cin * 3, ts), lambda b, o, i: (b, 0, o * ni + i)),
                pl.BlockSpec((3 * Cout, 3 * Cin), lambda b, o, i: (0, 0)),
                pl.BlockSpec((Cout, 3 * Cout), lambda b, o, i: (0, 0)),
            ],
            out_specs=(
                pl.BlockSpec((1, 1, Cout, 1), lambda b, o, i: (b, o, 0, 0)),
                pl.BlockSpec((1, 1, Cout, 1), lambda b, o, i: (b, o, 0, 0)),
            ),
        ),
        compiler_params=pltpu.CompilerParams(
            dimension_semantics=("parallel", "parallel", "arbitrary"),
            vmem_limit_bytes=_VMEM_LIMIT),
    )(x_int, wf_big, rmat)

    # Tiny glue: batch statistics (training-mode BN, biased variance).
    # TODO(synk): running_mean/running_var buffer updates (training side
    # effect) are not reproduced; normalization uses the batch statistics.
    # NOTE: one-pass variance (E[x^2]-E[x]^2) with a >=0 guard; acceptable in
    # f32 for typical ||p|| spreads, can cancel for extreme mean/std ratios.
    cnt = jnp.float32(B * S2)
    s1t = jnp.sum(s1, axis=(0, 1))                                # (Cout, 1)
    s2t = jnp.sum(s2, axis=(0, 1))
    mean = s1t / cnt
    var = jnp.maximum(s2t / cnt - mean * mean, 0.0)
    invstd = jax.lax.rsqrt(var + BN_EPS)
    mean_rep = jnp.repeat(mean, 3, axis=0)                        # (3*Cout, 1)
    invstd_rep = jnp.repeat(invstd, 3, axis=0)

    # --- pass 2: recompute p/d, BN rescale, VN leaky relu, dense store -----
    out = pl.pallas_call(
        functools.partial(_act_kernel,
                          negative_slope=float(negative_slope), c3=3 * Cout),
        out_shape=jax.ShapeDtypeStruct((B, 3 * Cout, S2p), jnp.float32),
        grid_spec=pltpu.PrefetchScalarGridSpec(
            num_scalar_prefetch=0,
            grid=(B, nt),
            in_specs=[
                pl.BlockSpec((1, Cin * 3, ts), lambda b, i: (b, 0, i)),
                pl.BlockSpec((6 * Cout, 3 * Cin), lambda b, i: (0, 0)),
                pl.BlockSpec((3 * Cout, 3 * Cout), lambda b, i: (0, 0)),
                pl.BlockSpec((3 * Cout, 1), lambda b, i: (0, 0)),
                pl.BlockSpec((3 * Cout, 1), lambda b, i: (0, 0)),
            ],
            out_specs=pl.BlockSpec((1, 3 * Cout, ts), lambda b, i: (b, 0, i)),
        ),
        compiler_params=pltpu.CompilerParams(
            dimension_semantics=("parallel", "parallel"),
            vmem_limit_bytes=_VMEM_LIMIT),
    )(x_int, w_big, gmat, mean_rep, invstd_rep)

    if S2p != S2:
        out = out[..., :S2]
    # Interleaved rows 3*o+k -> (Cout, 3) split is a bit-identical reshape.
    return out.reshape(B, Cout, 3, N, M)


def vn_linear_leaky_relu_ref(x, w_feat, w_dir, negative_slope=0.2):
    """Pure-JAX reference mirroring the PyTorch forward (training-mode BN)."""
    p = jnp.einsum('bcknm,oc->boknm', x, w_feat)
    d = jnp.einsum('bcknm,oc->boknm', x, w_dir)
    norm = jnp.sqrt(jnp.sum(p * p, axis=2))                       # [B, C_out, N, M]
    mean = jnp.mean(norm, axis=(0, 2, 3), keepdims=True)
    var = jnp.mean((norm - mean) ** 2, axis=(0, 2, 3), keepdims=True)
    norm_bn = (norm - mean) / jnp.sqrt(var + BN_EPS)
    p = p / norm[:, :, None] * norm_bn[:, :, None]
    dot = jnp.sum(p * d, axis=2, keepdims=True)
    dsq = jnp.sum(d * d, axis=2, keepdims=True)
    mask = (dot >= 0).astype(jnp.float32)
    ns = negative_slope
    return ns * p + (1 - ns) * (
        mask * p + (1 - mask) * (p - dot / (dsq + EPS) * d))


if __name__ == "__main__":
    key = jax.random.PRNGKey(0)
    B, Cin, Cout, N, M = 2, 8, 16, 16, 8          # spatial N*M = 128 (one lane tile)
    k1, k2, k3 = jax.random.split(key, 3)
    x = jax.random.normal(k1, (B, Cin, 3, N, M), dtype=jnp.float32)
    bound = 1.0 / (Cin ** 0.5)                    # nn.Linear default init range
    w_feat = jax.random.uniform(k2, (Cout, Cin), jnp.float32, -bound, bound)
    w_dir = jax.random.uniform(k3, (Cout, Cin), jnp.float32, -bound, bound)

    out = vn_linear_leaky_relu(x, w_feat, w_dir, negative_slope=0.2)
    jax.block_until_ready(out)

    ref = vn_linear_leaky_relu_ref(x, w_feat, w_dir, negative_slope=0.2)
    np.testing.assert_allclose(np.asarray(out), np.asarray(ref),
                               rtol=2e-3, atol=2e-3)
    print("KERNEL_OK")
</pallas_src>

<mosaic_0001>
module attributes {stable_mosaic.version = 11 : i64} {
  func.func @_stats_kernel(%arg0: i32, %arg1: i32, %arg2: i32, %arg3: memref<1x24x128xf32, #tpu.memory_space<vmem>>, %arg4: memref<48x24xf32, #tpu.memory_space<vmem>>, %arg5: memref<16x48xf32, #tpu.memory_space<vmem>>, %arg6: memref<1x1x16x1xf32, #tpu.memory_space<vmem>>, %arg7: memref<1x1x16x1xf32, #tpu.memory_space<vmem>>) attributes {dimension_semantics = [#tpu.dimension_semantics<parallel>, #tpu.dimension_semantics<parallel>, #tpu.dimension_semantics<arbitrary>], iteration_bounds = array<i64: 2, 1, 1>, scalar_prefetch = 0 : i64, scratch_operands = 0 : i64, tpu.core_type = #tpu.core_type<tc>, window_params = [{transform_indices = @transform_0, window_bounds = array<i64: 1, 24, 128>}, {pipeline_mode = #tpu.pipeline_mode<synchronous>, transform_indices = @transform_1, window_bounds = array<i64: 48, 24>}, {pipeline_mode = #tpu.pipeline_mode<synchronous>, transform_indices = @transform_2, window_bounds = array<i64: 16, 48>}, {transform_indices = @transform_3, window_bounds = array<i64: 1, 1, 16, 1>}, {transform_indices = @transform_4, window_bounds = array<i64: 1, 1, 16, 1>}]} {
    %c0_i32 = arith.constant 0 : i32
    %0 = arith.cmpi eq, %arg2, %c0_i32 : i32
    %1 = arith.extui %0 : i1 to i32
    %c0_i32_0 = arith.constant 0 : i32
    %2 = arith.cmpi ne, %1, %c0_i32_0 : i32
    scf.if %2 {
      %cst_26 = arith.constant 0.000000e+00 : f32
      %23 = vector.broadcast %cst_26 : f32 to vector<1x1x16x1xf32>
      %c0_27 = arith.constant 0 : index
      %c0_28 = arith.constant 0 : index
      %c0_29 = arith.constant 0 : index
      %c0_30 = arith.constant 0 : index
      %24 = vector.load %arg6[%c0_27, %c0_28, %c0_29, %c0_30] : memref<1x1x16x1xf32, #tpu.memory_space<vmem>>, vector<1x1x16x1xf32>
      tpu.vector_store %arg6[%c0_27, %c0_28, %c0_29, %c0_30], %23 {strides = array<i32>} : memref<1x1x16x1xf32, #tpu.memory_space<vmem>>, vector<1x1x16x1xf32>,
      %cst_31 = arith.constant 0.000000e+00 : f32
      %25 = vector.broadcast %cst_31 : f32 to vector<1x1x16x1xf32>
      %c0_32 = arith.constant 0 : index
      %c0_33 = arith.constant 0 : index
      %c0_34 = arith.constant 0 : index
      %c0_35 = arith.constant 0 : index
      %26 = vector.load %arg7[%c0_32, %c0_33, %c0_34, %c0_35] : memref<1x1x16x1xf32, #tpu.memory_space<vmem>>, vector<1x1x16x1xf32>
      tpu.vector_store %arg7[%c0_32, %c0_33, %c0_34, %c0_35], %25 {strides = array<i32>} : memref<1x1x16x1xf32, #tpu.memory_space<vmem>>, vector<1x1x16x1xf32>,
    } else {
    }
    %c0 = arith.constant 0 : index
    %c0_1 = arith.constant 0 : index
    %3 = vector.load %arg4[%c0, %c0_1] : memref<48x24xf32, #tpu.memory_space<vmem>>, vector<48x24xf32>
    %c0_2 = arith.constant 0 : index
    %c0_3 = arith.constant 0 : index
    %c0_4 = arith.constant 0 : index
    %4 = vector.load %arg3[%c0_2, %c0_3, %c0_4] : memref<1x24x128xf32, #tpu.memory_space<vmem>>, vector<1x24x128xf32>
    %5 = vector.shape_cast %4 : vector<1x24x128xf32> to vector<24x128xf32>
    %cst = arith.constant dense<0.000000e+00> : vector<48x128xf32>
    %6 = tpu.matmul %3, %5, %cst {dimension_numbers = #tpu.dot_dimension_numbers<[1], [0], [0], [1], [0, 0, 1, 1], [], []>} : vector<48x24xf32>, vector<24x128xf32>, vector<48x128xf32> -> vector<48x128xf32>
    %c0_5 = arith.constant 0 : index
    %c0_6 = arith.constant 0 : index
    %7 = vector.load %arg5[%c0_5, %c0_6] : memref<16x48xf32, #tpu.memory_space<vmem>>, vector<16x48xf32>
    %8 = arith.mulf %6, %6 : vector<48x128xf32>
    %cst_7 = arith.constant dense<0.000000e+00> : vector<16x128xf32>
    %9 = tpu.matmul %7, %8, %cst_7 {dimension_numbers = #tpu.dot_dimension_numbers<[1], [0], [0], [1], [0, 0, 1, 1], [], []>} : vector<16x48xf32>, vector<48x128xf32>, vector<16x128xf32> -> vector<16x128xf32>
    %10 = math.sqrt %9 : vector<16x128xf32>
    %c0_8 = arith.constant 0 : index
    %c0_9 = arith.constant 0 : index
    %c0_10 = arith.constant 0 : index
    %c0_11 = arith.constant 0 : index
    %11 = vector.load %arg6[%c0_8, %c0_9, %c0_10, %c0_11] : memref<1x1x16x1xf32, #tpu.memory_space<vmem>>, vector<1x1x16x1xf32>
    %cst_12 = arith.constant dense<0.000000e+00> : vector<16xf32>
    %12 = vector.multi_reduction <add>, %10, %cst_12 [1] : vector<16x128xf32> to vector<16xf32>
    %13 = vector.shape_cast %12 : vector<16xf32> to vector<16x1xf32>
    %14 = vector.shape_cast %13 : vector<16x1xf32> to vector<1x1x16x1xf32>
    %15 = arith.addf %11, %14 : vector<1x1x16x1xf32>
    %c0_13 = arith.constant 0 : index
    %c0_14 = arith.constant 0 : index
    %c0_15 = arith.constant 0 : index
    %c0_16 = arith.constant 0 : index
    %16 = vector.load %arg6[%c0_13, %c0_14, %c0_15, %c0_16] : memref<1x1x16x1xf32, #tpu.memory_space<vmem>>, vector<1x1x16x1xf32>
    tpu.vector_store %arg6[%c0_13, %c0_14, %c0_15, %c0_16], %15 {strides = array<i32>} : memref<1x1x16x1xf32, #tpu.memory_space<vmem>>, vector<1x1x16x1xf32>,
    %c0_17 = arith.constant 0 : index
    %c0_18 = arith.constant 0 : index
    %c0_19 = arith.constant 0 : index
    %c0_20 = arith.constant 0 : index
    %17 = vector.load %arg7[%c0_17, %c0_18, %c0_19, %c0_20] : memref<1x1x16x1xf32, #tpu.memory_space<vmem>>, vector<1x1x16x1xf32>
    %cst_21 = arith.constant dense<0.000000e+00> : vector<16xf32>
    %18 = vector.multi_reduction <add>, %9, %cst_21 [1] : vector<16x128xf32> to vector<16xf32>
    %19 = vector.shape_cast %18 : vector<16xf32> to vector<16x1xf32>
    %20 = vector.shape_cast %19 : vector<16x1xf32> to vector<1x1x16x1xf32>
    %21 = arith.addf %17, %20 : vector<1x1x16x1xf32>
    %c0_22 = arith.constant 0 : index
    %c0_23 = arith.constant 0 : index
    %c0_24 = arith.constant 0 : index
    %c0_25 = arith.constant 0 : index
    %22 = vector.load %arg7[%c0_22, %c0_23, %c0_24, %c0_25] : memref<1x1x16x1xf32, #tpu.memory_space<vmem>>, vector<1x1x16x1xf32>
    tpu.vector_store %arg7[%c0_22, %c0_23, %c0_24, %c0_25], %21 {strides = array<i32>} : memref<1x1x16x1xf32, #tpu.memory_space<vmem>>, vector<1x1x16x1xf32>,
    return
  }
  func.func @transform_0(%arg0: i32, %arg1: i32, %arg2: i32) -> (i32, i32, i32) {
    %c1_i32 = arith.constant 1 : i32
    %0 = arith.muli %arg1, %c1_i32 : i32
    %1 = arith.addi %0, %arg2 : i32
    %c0_i32 = arith.constant 0 : i32
    %c0_i32_0 = arith.constant 0 : i32
    return %arg0, %c0_i32, %1 : i32, i32, i32
  }
  func.func @transform_1(%arg0: i32, %arg1: i32, %arg2: i32) -> (i32, i32) {
    %c0_i32 = arith.constant 0 : i32
    %c0_i32_0 = arith.constant 0 : i32
    %c0_i32_1 = arith.constant 0 : i32
    return %c0_i32, %c0_i32_0 : i32, i32
  }
  func.func @transform_2(%arg0: i32, %arg1: i32, %arg2: i32) -> (i32, i32) {
    %c0_i32 = arith.constant 0 : i32
    %c0_i32_0 = arith.constant 0 : i32
    %c0_i32_1 = arith.constant 0 : i32
    return %c0_i32, %c0_i32_0 : i32, i32
  }
  func.func @transform_3(%arg0: i32, %arg1: i32, %arg2: i32) -> (i32, i32, i32, i32) {
    %c0_i32 = arith.constant 0 : i32
    %c0_i32_0 = arith.constant 0 : i32
    %c0_i32_1 = arith.constant 0 : i32
    return %arg0, %arg1, %c0_i32, %c0_i32_0 : i32, i32, i32, i32
  }
  func.func @transform_4(%arg0: i32, %arg1: i32, %arg2: i32) -> (i32, i32, i32, i32) {
    %c0_i32 = arith.constant 0 : i32
    %c0_i32_0 = arith.constant 0 : i32
    %c0_i32_1 = arith.constant 0 : i32
    return %arg0, %arg1, %c0_i32, %c0_i32_0 : i32, i32, i32, i32
  }
}

</mosaic_0001>

<bundles_post_ra>
// kernel: tpu_custom_call.1
= control target key start
LH: loop header
LB: loop body
LE: loop exit
PB: predicated region body
PF: predicated region fallthrough
CT: control target
= control target key end

     0   :  { %s819_s15 = smov 0   ;;  %s821_s16 = smov 0   ;;  %s915_s0 = inlined_call_operand.vmem [shape: f32[2,24,128], index: 0, kind: input, shape index: {}]   ;;  %s916_s1 = inlined_call_operand.vmem [shape: f32[48,24], index: 1, kind: input, shape index: {}]   ;;  %s917_s2 = inlined_call_operand.vmem [shape: f32[16,48], index: 2, kind: input, shape index: {}]   ;;  %s918_s3 = inlined_call_operand.vmem [shape: f32[2,1,16,1], index: 3, kind: output, shape index: {0}]   ;;  %s919_s4 = inlined_call_operand.vmem [shape: f32[2,1,16,1], index: 4, kind: output, shape index: {1}]  }
   0x1   :  { %s823_s17 = smov 0  }
   0x2 LB: > { %s34_s18 = sadd.s32 1, %s787_s16  ;;  %p674_p0 = scmp.ge.s32.totalorder %s791_s17, 1  ;;  %s791_s17 = sphi %s823_s17, %s15_s17   ;;  %s787_s16 = sphi %s821_s16, %s921_s16   ;;  %s783_s15 = sphi %s819_s15, %s920_s15  }
   0x3   : > { %p36_p1 = scmp.ge.s32.totalorder %s34_s18, 2  ;;  %p197_p2 = scmp.lt.s32.totalorder %s791_s17, 3 }
   0x5   : > { %s923_s18 = smov (%p36_p1, %s34_s18), 0  ;;  %p198_p3 = pnand %p674_p0, %p197_p2 }
   0x6   : > { %p241_p4 = scmp.lt.s32.totalorder (!%p198_p3), %s783_s15, 1 }
   0x7   : > { %201 = sbr.rel (%p198_p3) target bundleno = 596 (0x254), region = 32 }
   0xc   : > { %v277_v0 = vld [vmem:[%s916_s1] sm:$0xff]  ;;  %vm286_vm0 = vcmask 195584   ;;  %s925_s15 = smov (!%p241_p4, %s783_s15), 1  ;;  %v278_v4 = vld [vmem:[%s916_s1 + $0x8] sm:$0xff]  ;;  %v279_v5 = vld [vmem:[%s916_s1 + $0x10] sm:$0xff]  ;;  %vm408_vm1 = vcmask 392192  }
   0xd   : > { %715 = vmatprep.mubr.msk.f32.mxu0 %vm286_vm0, %v277_v0  ;;  %s739_s21 = smul.u32 24, %s925_s15  ;;  %v280_v6 = vld [vmem:[%s916_s1 + $0x18] sm:$0xff]  ;;  %v281_v7 = vld [vmem:[%s916_s1 + $0x20] sm:$0xff]  ;;  %v282_v8 = vld [vmem:[%s916_s1 + $0x28] sm:$0xff]  ;;  %s690_s13 = sshll.u32 %s925_s15, 4  ;;  %vm272_vm2 = vcmask 7168  }
   0xe   : > { %v400_v9 = vld [vmem:[%s917_s2] sm:$0xff]  ;;  %v401_v22 = vld [vmem:[%s917_s2 + $0x8] sm:$0xff]  ;;  %s879_s20 = scalar_lea.vmem %s918_s3, %s690_s13  ;;  %s884_s23 = scalar_lea.vmem %s919_s4, %s690_s13  ;;  %v793_v23 = vmov 0.0  }
   0xf   : > { %s248_s24 = scalar_lea.vmem %s915_s0, %s739_s21  ;;  %736 = vmatprep.mubr.msk.f32.mxu1 %vm408_vm1, %v400_v9  ;;  %275 = vst.msk [vmem:[%s884_s23] sm:$0xff] %vm272_vm2, %v793_v23  ;;  %273 = vst.msk [vmem:[%s879_s20] sm:$0xff] %vm272_vm2, %v793_v23 }
  0x10   : > { %v285_v1 = vld [vmem:[%s248_s24 + $0x10] sm:$0xff]  ;;  %v284_v2 = vld [vmem:[%s248_s24 + $0x8] sm:$0xff]  ;;  %v283_v3 = vld [vmem:[%s248_s24] sm:$0xff]  ;;  %274 = vst.msk [vmem:[%s879_s20 + $0x8] sm:$0xff] %vm272_vm2, %v793_v23 }
  0x11   : > { %709 = vmatprep.subr.mxu0 %v285_v1  ;;  %276 = vst.msk [vmem:[%s884_s23 + $0x8] sm:$0xff] %vm272_vm2, %v793_v23 }
  0x12   : > { %710 = vmatpush3.msra.mxu0 %v285_v1 }
  0x13   : > { %711 = vmatprep.subr.mxu0 %v284_v2 }
  0x14   : > { %712 = vmatpush3.msra.mxu0 %v284_v2 }
  0x15   : > { %713 = vmatprep.subr.mxu0 %v283_v3 }
  0x16   : > { %714 = vmatpush3.msra.mxu0 %v283_v3  ;;  %v515_v36 = vld [vmem:[%s884_s23] sm:$0xff] }
  0x17   : > { %716 = vmatmul.mubr.msk.f32.vlgmr.msra.gmra.mxu0 %vm286_vm0, %v278_v4  ;;  %v504_v42 = vld [vmem:[%s879_s20] sm:$0xff]  ;;  %v505_v45 = vld [vmem:[%s879_s20 + $0x8] sm:$0xff] }
  0x18   : > { %718 = vmatprep.mubr.msk.f32.mxu0 %vm286_vm0, %v279_v5  ;;  %v516_v39 = vld [vmem:[%s884_s23 + $0x8] sm:$0xff] }
  0x1b   : > { %719 = vmatmul.mubr.msk.f32.gmra.mxu0 %vm286_vm0, %v280_v6 }
  0x1c   : > { %721 = vmatprep.mubr.msk.f32.mxu0 %vm286_vm0, %v281_v7 }
  0x1f   : > { %722 = vmatmul.mubr.msk.f32.gmra.mxu0 %vm286_vm0, %v282_v8 }
  0xd7   : > { %v717_v10 = vpop.f32.mrf.mxu0 }
  0xd8   : > { %v403_v20 = vmul.f32 %v717_v10, %v717_v10 }
  0xd9   : > { %v371_v11 = vpop.f32.mrf.mxu0 }
  0xda   : > { %v402_v21 = vmul.f32 %v371_v11, %v371_v11 }
  0xdb   : > { %v720_v12 = vpop.f32.mrf.mxu0 }
  0xdc   : > { %v405_v18 = vmul.f32 %v720_v12, %v720_v12 }
  0xdd   : > { %v381_v13 = vpop.f32.mrf.mxu0 }
  0xde   : > { %v404_v19 = vmul.f32 %v381_v13, %v381_v13 }
  0xdf   : > { %v723_v14 = vpop.f32.mrf.mxu0 }
  0xe0   : > { %v407_v15 = vmul.f32 %v723_v14, %v723_v14 }
  0xe1   : > { %v391_v16 = vpop.f32.mrf.mxu0 }
  0xe2   : > { %v406_v17 = vmul.f32 %v391_v16, %v391_v16  ;;  %724 = vmatprep.subr.mxu1 %v407_v15 }
  0xe3   : > { %725 = vmatpush3.msra.mxu1 %v407_v15 }
  0xe4   : > { %726 = vmatprep.subr.mxu1 %v406_v17 }
  0xe5   : > { %727 = vmatpush3.msra.mxu1 %v406_v17 }
  0xe6   : > { %728 = vmatprep.subr.mxu1 %v405_v18 }
  0xe7   : > { %729 = vmatpush3.msra.mxu1 %v405_v18 }
  0xe8   : > { %730 = vmatprep.subr.mxu1 %v404_v19 }
  0xe9   : > { %731 = vmatpush3.msra.mxu1 %v404_v19 }
  0xea   : > { %732 = vmatprep.subr.mxu1 %v403_v20 }
  0xeb   : > { %733 = vmatpush3.msra.mxu1 %v403_v20 }
  0xec   : > { %734 = vmatprep.subr.mxu1 %v402_v21 }
  0xed   : > { %735 = vmatpush3.msra.mxu1 %v402_v21 }
  0xee   : > { %737 = vmatmul.mubr.msk.f32.vlgmr.msra.gmra.mxu1 %vm408_vm1, %v401_v22 }
 0x1ae   : > { %v738_v24 = vpop.f32.mrf.mxu1 }
 0x1af   : > { %765 = vrsqrt.f32 %v738_v24  ;;  %vm499_vm5 = vcmp.eq.f32.partialorder %v738_v24, inf  ;;  %v502_v34 = vand.u32 2147483648, %v738_v24  ;;  %vm501_vm6 = vcmp.eq.f32.partialorder %v738_v24, 0.0 }
 0x1b0   : > { %v481_v25 = vpop.f32.mrf.mxu1 }
 0x1b1   : > { %767 = vrsqrt.f32 %v481_v25  ;;  %517 = vadd.xlane.f32.xlu1 %v481_v25  ;;  %vm492_vm3 = vcmp.eq.f32.partialorder %v481_v25, inf  ;;  %v495_v30 = vand.u32 2147483648, %v481_v25  ;;  %vm494_vm4 = vcmp.eq.f32.partialorder %v481_v25, 0.0 }
 0x1b5   : > { %519 = vadd.xlane.f32.xlu1 %v738_v24 }
 0x1bc   : > { %v766_v26 = vpop.eup %765 }
 0x1bd   : > { %v498_v29 = vmul.f32 %v766_v26, %v738_v24 }
 0x1be   : > { %v768_v27 = vpop.eup %767 }
 0x1bf   : > { %v491_v28 = vmul.f32 %v768_v27, %v481_v25  ;;  %v500_v33 = vsel %vm499_vm5, %v738_v24, %v498_v29 }
 0x1c0   : > { %v503_v35 = vsel %vm501_vm6, %v502_v34, %v500_v33 }
 0x1c1   : > { %v493_v31 = vsel %vm492_vm3, %v481_v25, %v491_v28 }
 0x1c2   : > { %v496_v32 = vsel %vm494_vm4, %v495_v30, %v493_v31 }
 0x1c3   : > { %506 = vadd.xlane.f32.xlu0 %v496_v32 }
 0x1c7   : > { %508 = vadd.xlane.f32.xlu0 %v503_v35 }
 0x23a   : > { %v518_v37 = vpop.xlane.xlu1 %517 }
 0x23b   : > { %v521_v38 = vadd.f32 %v518_v37, %v515_v36 }
 0x23d   : > { %523 = vst.msk [vmem:[%s884_s23] sm:$0xff] %vm272_vm2, %v521_v38 }
 0x23e   : > { %v520_v40 = vpop.xlane.xlu1 %519 }
 0x23f   : > { %v522_v41 = vadd.f32 %v520_v40, %v516_v39 }
 0x241   : > { %524 = vst.msk [vmem:[%s884_s23 + $0x8] sm:$0xff] %vm272_vm2, %v522_v41 }
 0x24c   : > { %v507_v43 = vpop.xlane.xlu0 %506 }
 0x24d   : > { %v510_v44 = vadd.f32 %v507_v43, %v504_v42 }
 0x24f   : > { %513 = vst.msk [vmem:[%s879_s20] sm:$0xff] %vm272_vm2, %v510_v44 }
 0x250   : > { %v509_v46 = vpop.xlane.xlu0 %508 }
 0x251   : > { %v511_v47 = vadd.f32 %v509_v46, %v505_v45 }
 0x253   : > { %514 = vst.msk [vmem:[%s879_s20 + $0x8] sm:$0xff] %vm272_vm2, %v511_v47 }
 0x254 PF: > { %s15_s17 = sadd.s32 1, %s791_s17   ;;  %s920_s15 = smov %s787_s16 }
 0x255   : > { %p12_p5 = scmp.ge.s32.totalorder %s15_s17, 4   ;;  %s921_s16 = smov %s923_s18 }
 0x257   :  { %14 = sbr.rel (!%p12_p5) target bundleno = 2 (0x2), region = 78 }

</bundles_post_ra>
